<compile_context>
chip_gen: v7x
topology: tpu7x:2x2x1
jax: 0.10.0
libtpu: 0.0.40
codegen_flags: <defaults>
</compile_context>

<pallas_src>
import math

import jax
import jax.numpy as jnp
from jax.experimental import pallas as pl
from jax.experimental.pallas import tpu as pltpu


# ----------------------------- Pallas kernel ------------------------------ #
def _ff_multi_kernel(x_ref, b_ref, phase_ref, o_ref):
    # x_ref:     (TM, row_pack*d_in)            packed input rows (batch-tiled)
    # b_ref:     (row_pack*d_in, row_pack*W)    block-diag [B|B] weight (resident)
    # phase_ref: (1, row_pack*W)                0 for sin half, pi/2 for cos half
    # o_ref:     (TM, row_pack*W)               lane-dense output (W = 2*width_half)
    xb = jnp.dot(x_ref[...], b_ref[...], preferred_element_type=jnp.float32)
    o_ref[...] = jnp.sin(xb + phase_ref[...]).astype(o_ref.dtype)


# ------------------------------- wrapper ----------------------------------- #
def ff_multi_forward(x, b_flat, *, row_pack=None, block_rows=4096):
    """x: (N, n_input_dims) f32; b_flat: (n_input_dims, width_half) f32.
    Returns (N, 2*width_half) f32 == cat([sin(x@B), cos(x@B)], dim=1)."""
    n, d_in = x.shape
    width_half = b_flat.shape[1]
    width = 2 * width_half

    # Row-pack factor: packed output width must be a multiple of 128 lanes;
    # widen to ~512 lanes to amortize the lane-padded input tile.
    if row_pack is None:
        base = 128 // math.gcd(width, 128)               # smallest 128-multiple pack
        row_pack = base * max(1, 512 // (base * width))  # -> 8 for width=64

    # Pad N to a multiple of row_pack (pad rows are dropped after the call).
    n_pad = ((n + row_pack - 1) // row_pack) * row_pack
    if n_pad != n:
        x = jnp.pad(x, ((0, n_pad - n), (0, 0)))
    n_rows = n_pad // row_pack                           # packed (physical) rows
    k_dim = row_pack * d_in                              # matmul contraction dim
    w_pack = row_pack * width                            # packed output lane width

    # Parameters built once per call (cheap XLA ops outside the kernel).
    # [B | B] so sin(arg + phase) reproduces cat([sin(xB), cos(xB)], dim=1).
    b_dup = jnp.concatenate([b_flat, b_flat], axis=1)              # (d_in, width)
    b2 = jnp.kron(jnp.eye(row_pack, dtype=b_flat.dtype), b_dup)    # (k_dim, w_pack)
    phase_row = jnp.concatenate(
        [jnp.zeros((width_half,), jnp.float32),
         jnp.full((width_half,), jnp.pi / 2, jnp.float32)])
    phase = jnp.tile(phase_row, row_pack)[None, :]                 # (1, w_pack)

    # Packed input: x2[r, p*d_in + j] == x[r*row_pack + p, j] (free row-major view).
    x2 = x.reshape(n_rows, k_dim)

    # Row-tile size: 8 MiB f32 output tile at (block_rows=4096, w_pack=512).
    # Make sure big problems get >= 2 grid steps (both v7x TensorCores fed).
    tm = min(block_rows, n_rows)
    if n_rows >= 512 and pl.cdiv(n_rows, tm) < 2:
        tm = ((n_rows + 1) // 2 + 7) // 8 * 8            # half, rounded up to x8
    grid = (pl.cdiv(n_rows, tm),)

    cost = pl.CostEstimate(
        flops=2 * n_rows * k_dim * w_pack,               # tiny block-diag matmul
        transcendentals=n_pad * width,                   # one sin per output element
        bytes_accessed=4 * (n_pad * d_in + n_pad * width
                            + int(b2.size) + int(phase.size)),
    )

    out2 = pl.pallas_call(
        _ff_multi_kernel,
        out_shape=jax.ShapeDtypeStruct((n_rows, w_pack), x.dtype),
        grid=grid,
        in_specs=[
            pl.BlockSpec((tm, k_dim), lambda i: (i, 0)),       # batch-tiled input
            pl.BlockSpec((k_dim, w_pack), lambda i: (0, 0)),   # resident weight
            pl.BlockSpec((1, w_pack), lambda i: (0, 0)),       # resident phase
        ],
        out_specs=pl.BlockSpec((tm, w_pack), lambda i: (i, 0)),
        compiler_params=pltpu.CompilerParams(
            dimension_semantics=("parallel",),      # shard batch axis on v7x megacore
            vmem_limit_bytes=32 * 1024 * 1024,      # fits v5e/v6e/v7x scoped VMEM
        ),
        cost_estimate=cost,
    )(x2, b2, phase)

    # Free row-major un-pack back to (N, width); drop pad rows.
    return out2.reshape(n_pad, width)[:n]


# ---------------------------------- main ----------------------------------- #
if __name__ == "__main__":
    key = jax.random.PRNGKey(0)
    kx, kb = jax.random.split(key)

    # Module defaults
    n_input_dims = 1
    sigma_list = (1.0, 5.0, 10.0, 50.0)
    width = 64
    n_ff = len(sigma_list)
    width_half = width // 2

    # Parameters: B0 ~ N(0,1), scaled by 2*pi*sigma, then flattened to the
    # (n_input_dims, width_half) matrix that the einsum + view is equivalent to.
    b0 = jax.random.normal(
        kb, (n_input_dims, width_half // n_ff, n_ff), jnp.float32)
    sigma = jnp.asarray(sigma_list, jnp.float32).reshape(1, 1, n_ff) * (2.0 * jnp.pi)
    b_flat = (b0 * sigma).reshape(n_input_dims, width_half)

    # Small batch of inputs (50 rows also exercises the pad-to-row_pack path).
    x = jax.random.normal(kx, (50, n_input_dims), jnp.float32)

    y = ff_multi_forward(x, b_flat)
    jax.block_until_ready(y)

    # Pure-JAX reference (same math as the module).
    xb_ref = x @ b_flat
    ref = jnp.concatenate([jnp.sin(xb_ref), jnp.cos(xb_ref)], axis=1)
    assert y.shape == (50, width)
    # Arguments reach |2*pi*50*x| ~ a few thousand radians: f32 range reduction
    # (plus the cos == sin(.+pi/2) fusion) costs a few extra ulps vs the XLA
    # reference, hence the loose-ish tolerance.
    err = float(jnp.max(jnp.abs(y - ref)))
    assert jnp.allclose(y, ref, atol=5e-3, rtol=5e-3), err

    print("KERNEL_OK")
</pallas_src>

<mosaic_0001>
module attributes {stable_mosaic.version = 11 : i64} {
  func.func @_ff_multi_kernel(%arg0: i32, %arg1: memref<7x8xf32, #tpu.memory_space<vmem>>, %arg2: memref<8x512xf32, #tpu.memory_space<vmem>>, %arg3: memref<1x512xf32, #tpu.memory_space<vmem>>, %arg4: memref<7x512xf32, #tpu.memory_space<vmem>>) attributes {dimension_semantics = [#tpu.dimension_semantics<parallel>], iteration_bounds = array<i64: 1>, scalar_prefetch = 0 : i64, scratch_operands = 0 : i64, tpu.core_type = #tpu.core_type<tc>, window_params = [{transform_indices = @transform_0, window_bounds = array<i64: 7, 8>}, {pipeline_mode = #tpu.pipeline_mode<synchronous>, transform_indices = @transform_1, window_bounds = array<i64: 8, 512>}, {pipeline_mode = #tpu.pipeline_mode<synchronous>, transform_indices = @transform_2, window_bounds = array<i64: 1, 512>}, {transform_indices = @transform_3, window_bounds = array<i64: 7, 512>}]} {
    %c0 = arith.constant 0 : index
    %c0_0 = arith.constant 0 : index
    %0 = vector.load %arg1[%c0, %c0_0] : memref<7x8xf32, #tpu.memory_space<vmem>>, vector<7x8xf32>
    %c0_1 = arith.constant 0 : index
    %c0_2 = arith.constant 0 : index
    %1 = vector.load %arg2[%c0_1, %c0_2] : memref<8x512xf32, #tpu.memory_space<vmem>>, vector<8x512xf32>
    %cst = arith.constant dense<0.000000e+00> : vector<7x512xf32>
    %2 = tpu.matmul %0, %1, %cst {dimension_numbers = #tpu.dot_dimension_numbers<[1], [0], [0], [1], [0, 0, 1, 1], [], []>} : vector<7x8xf32>, vector<8x512xf32>, vector<7x512xf32> -> vector<7x512xf32>
    %c0_3 = arith.constant 0 : index
    %c0_4 = arith.constant 0 : index
    %3 = vector.load %arg3[%c0_3, %c0_4] : memref<1x512xf32, #tpu.memory_space<vmem>>, vector<1x512xf32>
    %4 = vector.broadcast %3 : vector<1x512xf32> to vector<7x512xf32>
    %5 = arith.addf %2, %4 : vector<7x512xf32>
    %6 = math.sin %5 : vector<7x512xf32>
    %c0_5 = arith.constant 0 : index
    %c0_6 = arith.constant 0 : index
    %7 = vector.load %arg4[%c0_5, %c0_6] : memref<7x512xf32, #tpu.memory_space<vmem>>, vector<7x512xf32>
    tpu.vector_store %arg4[%c0_5, %c0_6], %6 {strides = array<i32>} : memref<7x512xf32, #tpu.memory_space<vmem>>, vector<7x512xf32>,
    return
  }
  func.func @transform_0(%arg0: i32) -> (i32, i32) {
    %c0_i32 = arith.constant 0 : i32
    %c0_i32_0 = arith.constant 0 : i32
    return %arg0, %c0_i32 : i32, i32
  }
  func.func @transform_1(%arg0: i32) -> (i32, i32) {
    %c0_i32 = arith.constant 0 : i32
    %c0_i32_0 = arith.constant 0 : i32
    %c0_i32_1 = arith.constant 0 : i32
    return %c0_i32, %c0_i32_0 : i32, i32
  }
  func.func @transform_2(%arg0: i32) -> (i32, i32) {
    %c0_i32 = arith.constant 0 : i32
    %c0_i32_0 = arith.constant 0 : i32
    %c0_i32_1 = arith.constant 0 : i32
    return %c0_i32, %c0_i32_0 : i32, i32
  }
  func.func @transform_3(%arg0: i32) -> (i32, i32) {
    %c0_i32 = arith.constant 0 : i32
    %c0_i32_0 = arith.constant 0 : i32
    return %arg0, %c0_i32 : i32, i32
  }
}

</mosaic_0001>

<bundles_post_ra>
// kernel: tpu_custom_call.1
= control target key start
LH: loop header
LB: loop body
LE: loop exit
PB: predicated region body
PF: predicated region fallthrough
CT: control target
= control target key end

     0   :  { %8 = vsyncpa [#allocation3], 0  ;;  %s1156_s0 = inlined_call_operand.hbm [shape: f32[7,8], index: 0, kind: input, shape index: {}]   ;;  %s1157_s1 = inlined_call_operand.hbm [shape: f32[8,512], index: 1, kind: input, shape index: {}]   ;;  %s1158_s2 = inlined_call_operand.vmem [shape: f32[1,512], index: 2, kind: input, shape index: {}]   ;;  %s1159_s3 = inlined_call_operand.hbm [shape: f32[7,512], index: 3, kind: output, shape index: {}]  }
   0x1   :  { %9 = vsyncpa [#allocation6], 0 }
   0x2   :  { %10 = vsyncpa [#allocation4], 0  ;;  %s780_s12 = smov [#allocation2]   ;;  %s781_s14 = smov [#allocation5]  }
   0x3   :  { %s17_s13 = sshll.u32 %s780_s12, 4  ;;  %s27_s15 = sshll.u32 %s781_s14, 4  ;;  %s18_s13 = int_to_ptr.vmem [resolvable:$true] %s17_s13  ;;  %s28_s15 = int_to_ptr.vmem [resolvable:$true] %s27_s15 }
   0x4   :  { %s708_s18 = scalar_lea.hbm %s1156_s0, 128 }
   0x5   :  { %p709_p0 = scmp.ne.s32.totalorder %s1156_s0, %s708_s18  ;;  %p712_p1 = scmp.lt.u32.totalorder %s708_s18, %s1156_s0 }
   0x7   :  { %p714_p2 = pnand %p712_p1, %p709_p0 }
   0x9   :  { %717 = shalt.err (!%p714_p2)
}
   0xa   :  { %s718_s23 = scalar_lea.vmem %s18_s13, 128  ;;  %p723_p4 = scmp.lt.s32.totalorder %s18_s13, %s18_s13 }
   0xb   :  { %p719_p3 = scmp.ne.s32.totalorder %s18_s13, %s718_s23  ;;  %p724_p5 = scmp.lt.s32.totalorder %s718_s23, %s718_s23 }
   0xd   :  { %p725_p6 = por %p724_p5, %p723_p4 }
   0xf   :  { %p726_p7 = pnand %p725_p6, %p719_p3 }
  0x11   :  { %729 = shalt.err (!%p726_p7)
}
  0x12   :  { %20 = dma.hbm_to_vmem [thread:$0]  %s1156_s0, 128, %s18_s13, [#allocation3]  }
  0x13   :  { %s730_s28 = scalar_lea.hbm %s1157_s1, 512 }
  0x14   :  { %p731_p8 = scmp.ne.s32.totalorder %s1157_s1, %s730_s28  ;;  %p734_p9 = scmp.lt.u32.totalorder %s730_s28, %s1157_s1 }
  0x16   :  { %p736_p10 = pnand %p734_p9, %p731_p8 }
  0x18   :  { %739 = shalt.err (!%p736_p10)
}
  0x19   :  { %s740_s6 = scalar_lea.vmem %s28_s15, 512  ;;  %p745_p12 = scmp.lt.s32.totalorder %s28_s15, %s28_s15 }
  0x1a   :  { %p741_p11 = scmp.ne.s32.totalorder %s28_s15, %s740_s6  ;;  %p746_p13 = scmp.lt.s32.totalorder %s740_s6, %s740_s6 }
  0x1c   :  { %p747_p0 = por %p746_p13, %p745_p12 }
  0x1e   :  { %p748_p1 = pnand %p747_p0, %p741_p11 }
  0x20   :  { %751 = shalt.err (!%p748_p1)
}
  0x21   :  { %30 = dma.hbm_to_vmem [thread:$0]  %s1157_s1, 512, %s28_s15, [#allocation6]  }
  0x22   :  { %774 = dma.done.wait [#allocation3], 128  }
  0x23   :  { %775 = vsyncadd [#allocation3], 4294967168 }
  0x24   :  { %776 = dma.done.wait [#allocation6], 512  }
  0x25   :  { %777 = vsyncadd [#allocation6], 4294966784  ;;  %v782_v0 = vmov 0.0   ;;  %v41_v1 = vld [vmem:[#allocation5 + $0x8] sm:$0xff]  ;;  %v43_v2 = vld [vmem:[#allocation5 + $0x18] sm:$0xff]  ;;  %vm66_vm0 = vcmask 64512   ;;  %v46_v6 = vlaneseq }
  0x26   :  { %134 = vmatprep.mubr.f32.mxu0 %v782_v0  ;;  %205 = vmatprep.mubr.f32.mxu1 %v782_v0  ;;  %v40_v3 = vld [vmem:[#allocation5] sm:$0xff]  ;;  %v42_v4 = vld [vmem:[#allocation5 + $0x10] sm:$0xff]  ;;  %v39_v5 = vld [vmem:[#allocation2] sm:$0x7f]  ;;  %v783_v55 = vmov 683565275  }
  0x27   :  { %70 = vmatprep.subr.mxu0 %v41_v1  ;;  %141 = vmatprep.subr.mxu1 %v43_v2  ;;  %v47_v7 = vshrl.u32 %v46_v6, 7  ;;  %v44_v10 = vld [vmem:[%s1158_s2] sm:$0xf]  ;;  %v784_v59 = vmov 2475754826   ;;  %s789_s2 = smov [#allocation7]  }
  0x28   :  { %71 = vmatpush1.msra.mxu0 %v40_v3  ;;  %142 = vmatpush1.msra.mxu1 %v42_v4  ;;  %v785_v61 = vmov 2131351028   ;;  %v786_v63 = vmov 2102212464   ;;  %v787_v1 = vmov 920167782  }
  0x29   :  { %648 = vmatmul.mubr.msk.f32.vlgmr.msra.gmra.mrb[0].mxu0 %vm66_vm0, %v39_v5  ;;  %649 = vmatmul.mubr.msk.f32.vlgmr.msra.gmra.mrb[0].mxu1 %vm66_vm0, %v39_v5  ;;  %v48_v8 = vsub.s32 0, %v47_v7  ;;  %v56_v9 = vsub.s32 2, %v47_v7  ;;  %v52_v11 = vsub.s32 1, %v47_v7  ;;  %v60_v20 = vsub.s32 3, %v47_v7  ;;  %s638_s9 = sshll.u32 %s789_s2, 4  ;;  %s639_s9 = int_to_ptr.vmem [resolvable:$true] %s638_s9 }
  0x2a   :  { %s752_s10 = scalar_lea.vmem %s639_s9, 512  ;;  %p757_p3 = scmp.lt.s32.totalorder %s639_s9, %s639_s9 }
  0x2b   :  { %v49_v12 = vrot.slane %v44_v10, %v48_v8  ;;  %v57_v13 = vrot.slane %v44_v10, %v56_v9  ;;  %v53_v14 = vrot.slane %v44_v10, %v52_v11  ;;  %v61_v30 = vrot.slane %v44_v10, %v60_v20  ;;  %p753_p2 = scmp.ne.s32.totalorder %s639_s9, %s752_s10  ;;  %p758_p4 = scmp.lt.s32.totalorder %s752_s10, %s752_s10 }
  0x2c   :  { %v788_v8 = vmov 1326507024  }
  0x2d   :  { %p759_p5 = por %p758_p4, %p757_p3 }
  0x2f   :  { %p760_p6 = pnand %p759_p5, %p753_p2 }
  0xfc   :  { %v136_v15 = vpop.f32.mrb[0].mxu0  ;;  %v207_v16 = vpop.f32.mrb[0].mxu1 }
  0xfd   :  { %v837_v17 = vadd.f32 %v136_v15, %v49_v12  ;;  %v839_v18 = vadd.f32 %v207_v16, %v57_v13  ;;  %v138_v19 = vpop.f32.mrb[1].mxu0  ;;  %v209_v21 = vpop.f32.mrb[1].mxu1 }
  0xfe   :  { %v841_v22 = vadd.f32 %v138_v19, %v53_v14  ;;  %v853_v39 = vadd.f32 %v209_v21, %v61_v30 }
  0xff   :  { %v212_v23 = vand.u32 2147483647, %v837_v17  ;;  %v215_v24 = vand.u32 2139095040, %v837_v17  ;;  %v420_v25 = vand.u32 2147483647, %v839_v18  ;;  %v423_v26 = vand.u32 2139095040, %v839_v18 }
 0x100   :  { %v316_v28 = vand.u32 2147483647, %v841_v22  ;;  %v319_v29 = vand.u32 2139095040, %v841_v22  ;;  %v524_v49 = vand.u32 2147483647, %v853_v39  ;;  %v527_v53 = vand.u32 2139095040, %v853_v39 }
 0x101   :  { %v216_v27 = vshrl.u32 %v215_v24, 23  ;;  %v219_v31 = vand.u32 8388607, %v212_v23  ;;  %v424_v32 = vshrl.u32 %v423_v26, 23  ;;  %v427_v33 = vand.u32 8388607, %v420_v25 }
 0x102   :  { %v320_v35 = vshrl.u32 %v319_v29, 23  ;;  %v857_v43 = vand.u32 8388607, %v316_v28  ;;  %vm214_vm13 = vcmp.lt.s32.totalorder %v837_v17, 0  ;;  %vm955_vm15 = vcmp.le.f32.partialorder %v212_v23, 0.7853982 }
 0x103   :  { %v650_v34 = vadd.s32 4294967169, %v216_v27  ;;  %v658_v36 = vadd.s32 4294967169, %v424_v32  ;;  %v220_v40 = vor.u32 8388608, %v219_v31  ;;  %v428_v41 = vor.u32 8388608, %v427_v33 }
 0x104   :  { %v654_v38 = vadd.s32 4294967169, %v320_v35  ;;  %v324_v52 = vor.u32 8388608, %v857_v43 }
 0x105   :  { %v222_v37 = vadd.s32 1, %v650_v34  ;;  %v430_v42 = vadd.s32 1, %v658_v36  ;;  %v862_v50 = vshll.u32 %v220_v40, 8  ;;  %v864_v51 = vshll.u32 %v428_v41, 8 }
 0x106   :  { %v859_v45 = vadd.s32 1, %v654_v38 }
 0x107   :  { %vm223_vm1 = vcmp.gt.s32.totalorder %v222_v37, 0  ;;  %vm431_vm2 = vcmp.gt.s32.totalorder %v430_v42, 0 }
 0x108   :  { %v224_v44 = vsel %vm223_vm1, %v222_v37, 0  ;;  %v432_v48 = vsel %vm431_vm2, %v430_v42, 0  ;;  %vm327_vm3 = vcmp.gt.s32.totalorder %v859_v45, 0 }
 0x109   :  { %v225_v46 = vshrl.u32 %v224_v44, 5  ;;  %v226_v47 = vand.u32 31, %v224_v44  ;;  %v869_v57 = vshrl.u32 %v432_v48, 5  ;;  %v434_v58 = vand.u32 31, %v432_v48 }
 0x10b   :  { %v227_v54 = vsub.s32 32, %v226_v47  ;;  %v229_v56 = vshll.u32 %v783_v55, %v226_v47  ;;  %v232_v60 = vshll.u32 %v784_v59, %v226_v47  ;;  %v235_v62 = vshll.u32 %v785_v61, %v226_v47 }
 0x10c   :  { %v238_v0 = vshll.u32 %v786_v63, %v226_v47  ;;  %v241_v2 = vshll.u32 %v787_v1, %v226_v47  ;;  %vm244_vm4 = vcmp.lt.s32.totalorder %v225_v46, 1  ;;  %vm245_vm5 = vcmp.lt.s32.totalorder %v225_v46, 2 }
 0x10d   :  { %v230_v3 = vshrl.u32 %v784_v59, %v227_v54  ;;  %v233_v4 = vshrl.u32 %v785_v61, %v227_v54  ;;  %v236_v5 = vshrl.u32 %v786_v63, %v227_v54  ;;  %v228_v6 = vshrl.u32 %v783_v55, %v227_v54 }
 0x10e   :  { %v239_v7 = vshrl.u32 %v787_v1, %v227_v54  ;;  %v242_v9 = vshrl.u32 %v788_v8, %v227_v54  ;;  %v435_v13 = vsub.s32 32, %v434_v58  ;;  %vm246_vm6 = vcmp.lt.s32.totalorder %v225_v46, 3 }
 0x10f   :  { %v231_v10 = vor.u32 %v230_v3, %v229_v56  ;;  %v234_v11 = vor.u32 %v233_v4, %v232_v60  ;;  %v237_v12 = vor.u32 %v236_v5, %v235_v62  ;;  %vm247_vm7 = vcmp.lt.s32.totalorder %v225_v46, 4 }
 0x110   :  { %v240_v14 = vor.u32 %v239_v7, %v238_v0  ;;  %v243_v15 = vor.u32 %v242_v9, %v241_v2  ;;  %v437_v29 = vshll.u32 %v783_v55, %v434_v58  ;;  %v438_v32 = vshrl.u32 %v784_v59, %v435_v13 }
 0x111   :  { %v248_v16 = vsel %vm244_vm4, %v228_v6, %v231_v10  ;;  %v249_v19 = vsel %vm247_vm7, %v237_v12, 2102212464  ;;  %v252_v20 = vsel %vm244_vm4, %v231_v10, %v234_v11  ;;  %v256_v21 = vsel %vm244_vm4, %v234_v11, %v237_v12 }
 0x112   :  { %v250_v24 = vsel %vm246_vm6, %v234_v11, %v249_v19  ;;  %v253_v26 = vsel %vm247_vm7, %v240_v14, 920167782  ;;  %v257_v27 = vsel %vm247_vm7, %v243_v15, 1326507024  ;;  %v440_v33 = vshll.u32 %v784_v59, %v434_v58 }
 0x113   :  { %v254_v30 = vsel %vm246_vm6, %v237_v12, %v253_v26  ;;  %v258_v31 = vsel %vm246_vm6, %v240_v14, %v257_v27  ;;  %v251_v34 = vsel %vm245_vm5, %v248_v16, %v250_v24  ;;  %v441_v37 = vshrl.u32 %v785_v61, %v435_v13 }
 0x114   :  { %v255_v35 = vsel %vm245_vm5, %v252_v20, %v254_v30  ;;  %v259_v36 = vsel %vm245_vm5, %v256_v21, %v258_v31  ;;  %v439_v44 = vor.u32 %v438_v32, %v437_v29  ;;  %v443_v48 = vshll.u32 %v785_v61, %v434_v58 }
 0x115   :  { %v893_v38 = vmul.u32.u64.low %v862_v50, %v259_v36  ;;  %v894_v40 = vmul.u32.u64.high %v862_v50, %v259_v36, %v893_v38  ;;  %v897_v41 = vmul.u32.u64.low %v862_v50, %v255_v35  ;;  %v898_v42 = vmul.u32.u64.high %v862_v50, %v255_v35, %v897_v41 }
 0x116   :  { %v442_v47 = vor.u32 %v441_v37, %v440_v33  ;;  %v444_v54 = vshrl.u32 %v786_v63, %v435_v13  ;;  %v446_v46 = vshll.u32 %v786_v63, %v434_v58  ;;  %v447_v56 = vshrl.u32 %v787_v1, %v435_v13 }
 0x117   :  { %v450_v60 = vshrl.u32 %v788_v8, %v435_v13  ;;  %v328_v62 = vsel %vm327_vm3, %v859_v45, 0  ;;  %v267_v0 = vmul.u32 %v862_v50, %v251_v34  ;;  %v436_v2 = vshrl.u32 %v783_v55, %v435_v13 }
 0x118   :  { %v445_v3 = vor.u32 %v444_v54, %v443_v48  ;;  %v449_v4 = vshll.u32 %v787_v1, %v434_v58  ;;  %vm269_vm8 = vc.u32 %v894_v40, %v897_v41  ;;  %v270_v5 = vadd.s32 1, %v898_v42 }
 0x119   :  { %v448_v6 = vor.u32 %v447_v56, %v446_v46  ;;  %vm452_vm9 = vcmp.lt.s32.totalorder %v869_v57, 1  ;;  %vm454_vm10 = vcmp.lt.s32.totalorder %v869_v57, 3  ;;  %vm455_vm11 = vcmp.lt.s32.totalorder %v869_v57, 4 }
 0x11a   :  { %v451_v7 = vor.u32 %v450_v60, %v449_v4  ;;  %v460_v45 = vsel %vm452_vm9, %v439_v44, %v442_v47  ;;  %v271_v50 = vsel %vm269_vm8, %v270_v5, %v898_v42  ;;  %v457_v9 = vsel %vm455_vm11, %v445_v3, 2102212464 }
 0x11b   :  { %v461_v10 = vsel %vm455_vm11, %v448_v6, 920167782  ;;  %v464_v11 = vsel %vm452_vm9, %v442_v47, %v445_v3  ;;  %v272_v58 = vadd.s32 %v271_v50, %v267_v0  ;;  %vm453_vm12 = vcmp.lt.s32.totalorder %v869_v57, 2 }
 0x11c   :  { %v462_v12 = vsel %vm454_vm10, %v445_v3, %v461_v10  ;;  %v465_v13 = vsel %vm455_vm11, %v451_v7, 1326507024  ;;  %v456_v14 = vsel %vm452_vm9, %v436_v2, %v439_v44  ;;  %v458_v15 = vsel %vm454_vm10, %v442_v47, %v457_v9 }
 0x11d   :  { %v463_v16 = vsel %vm453_vm12, %v460_v45, %v462_v12  ;;  %v466_v19 = vsel %vm454_vm10, %v448_v6, %v465_v13  ;;  %v273_v20 = vadd.s32 536870912, %v272_v58  ;;  %v330_v30 = vand.u32 31, %v328_v62 }
 0x11e   :  { %v467_v21 = vsel %vm453_vm12, %v464_v11, %v466_v19  ;;  %v921_v24 = vmul.u32.u64.low %v864_v51, %v463_v16  ;;  %v922_v26 = vmul.u32.u64.high %v864_v51, %v463_v16, %v921_v24  ;;  %v459_v57 = vsel %vm453_vm12, %v456_v14, %v458_v15 }
 0x11f   :  { %v926_v27 = vmul.u32.u64.low %v864_v51, %v467_v21  ;;  %v927_v29 = vmul.u32.u64.high %v864_v51, %v467_v21, %v926_v27  ;;  %v274_v31 = vshrl.u32 %v273_v20, 30  ;;  %v331_v32 = vsub.s32 32, %v330_v30 }
 0x120   :  { %v528_v33 = vshrl.u32 %v527_v53, 23  ;;  %v933_v34 = vand.u32 8388607, %v524_v49  ;;  %v478_v36 = vadd.s32 1, %v922_v26  ;;  %v937_v37 = vshrl.u32 %v328_v62, 5 }
 0x121   :  { %v275_v35 = vshll.u32 %v274_v31, 30  ;;  %v941_v38 = vshll.u32 %v324_v52, 8  ;;  %v475_v42 = vmul.u32 %v864_v51, %v459_v57  ;;  %vm477_vm14 = vc.u32 %v927_v29, %v921_v24 }
 0x122   :  { %v333_v53 = vshll.u32 %v783_v55, %v330_v30  ;;  %v334_v44 = vshrl.u32 %v784_v59, %v331_v32  ;;  %v479_v48 = vsel %vm477_vm14, %v478_v36, %v922_v26  ;;  %v336_v54 = vshll.u32 %v784_v59, %v330_v30 }
 0x123   :  { %v948_v47 = vsub.s32 %v272_v58, %v275_v35  ;;  %v337_v46 = vshrl.u32 %v785_v61, %v331_v32  ;;  %v298_v51 = vsub.s32 4, %v274_v31  ;;  %v480_v52 = vadd.s32 %v479_v48, %v475_v42 }
 0x124   :  { %v339_v56 = vshll.u32 %v785_v61, %v330_v30  ;;  %v340_v60 = vshrl.u32 %v786_v63, %v331_v32  ;;  %v335_v0 = vor.u32 %v334_v44, %v333_v53  ;;  %v342_v2 = vshll.u32 %v786_v63, %v330_v30 }
 0x125   :  { %v278_v62 = vsub.s32 0, %v948_v47  ;;  %v343_v3 = vshrl.u32 %v787_v1, %v331_v32  ;;  %v481_v4 = vadd.s32 536870912, %v480_v52  ;;  %v338_v5 = vor.u32 %v337_v46, %v336_v54 }
 0x126   :  { %v345_v23 = vshll.u32 %v787_v1, %v330_v30  ;;  %v346_v6 = vshrl.u32 %v788_v8, %v331_v32  ;;  %v341_v45 = vor.u32 %v340_v60, %v339_v56  ;;  %v662_v9 = vadd.s32 4294967169, %v528_v33 }
 0x127   :  { %v651_v7 = vmin.u32 %v278_v62, %v948_v47  ;;  %v344_v50 = vor.u32 %v343_v3, %v342_v2  ;;  %v268_v10 = vadd.s32 %v897_v41, %v894_v40  ;;  %v482_v11 = vshrl.u32 %v481_v4, 30 }
 0x128   :  { %v347_v58 = vor.u32 %v346_v6, %v345_v23  ;;  %vm351_vm0 = vcmp.lt.s32.totalorder %v937_v37, 4  ;;  %vm348_vm1 = vcmp.lt.s32.totalorder %v937_v37, 1  ;;  %vm350_vm2 = vcmp.lt.s32.totalorder %v937_v37, 3 }
 0x129   :  { %v280_v12 = vclz %v651_v7  ;;  %v357_v13 = vsel %vm351_vm0, %v344_v50, 920167782  ;;  %v299_v14 = vsel %vm214_vm13, %v298_v51, %v274_v31  ;;  %v483_v15 = vshll.u32 %v482_v11, 30 }
 0x12a   :  { %v332_v16 = vshrl.u32 %v783_v55, %v331_v32  ;;  %v356_v40 = vsel %vm348_vm1, %v335_v0, %v338_v5  ;;  %vm422_vm3 = vcmp.lt.s32.totalorder %v839_v18, 0  ;;  %v358_v19 = vsel %vm350_vm2, %v341_v45, %v357_v13 }
 0x12b   :  { %v652_v41 = vadd.s32 4294967294, %v280_v12  ;;  %v360_v20 = vsel %vm348_vm1, %v338_v5, %v341_v45  ;;  %v361_v21 = vsel %vm351_vm0, %v347_v58, 1326507024  ;;  %v986_v26 = vsub.s32 %v480_v52, %v483_v15 }
 0x12c   :  { %vm349_vm4 = vcmp.lt.s32.totalorder %v937_v37, 2  ;;  %v353_v27 = vsel %vm351_vm0, %v341_v45, 2102212464  ;;  %v362_v30 = vsel %vm350_vm2, %v344_v50, %v361_v21  ;;  %v301_v31 = vsel %vm955_vm15, 0, %v299_v14 }
 0x12d   :  { %vm653_vm5 = vcmp.lt.s32.totalorder %v652_v41, 0  ;;  %v352_v57 = vsel %vm348_vm1, %v332_v16, %v335_v0  ;;  %v363_v32 = vsel %vm349_vm4, %v360_v20, %v362_v30  ;;  %v486_v35 = vsub.s32 0, %v986_v26 }
 0x12e   :  { %v283_v33 = vsel %vm653_vm5, 0, %v652_v41  ;;  %v359_v36 = vsel %vm349_vm4, %v356_v40, %v358_v19  ;;  %v534_v42 = vadd.s32 1, %v662_v9  ;;  %v506_v48 = vsub.s32 4, %v482_v11 }
 0x12f   :  { %v284_v53 = vsub.s32 32, %v283_v33  ;;  %v288_v44 = vsub.s32 4294967266, %v283_v33  ;;  %v354_v54 = vsel %vm350_vm2, %v338_v5, %v353_v27  ;;  %v285_v46 = vshll.u32 %v948_v47, %v283_v33 }
 0x130   :  { %v659_v51 = vmin.u32 %v486_v35, %v986_v26  ;;  %v1007_v52 = vmul.u32.u64.low %v941_v38, %v363_v32  ;;  %v1008_v56 = vmul.u32.u64.high %v941_v38, %v363_v32, %v1007_v52  ;;  %v305_v3 = vadd.s32 3, %v301_v31 }
 0x131   :  { %v286_v60 = vshrl.u32 %v268_v10, %v284_v53  ;;  %v289_v62 = vadd.s32 127, %v288_v44  ;;  %v1011_v0 = vmul.u32.u64.low %v941_v38, %v359_v36  ;;  %v1012_v2 = vmul.u32.u64.high %v941_v38, %v359_v36, %v1011_v0 }
 0x132   :  { %vm1017_vm6 = vcmp.le.f32.partialorder %v420_v25, 0.7853982  ;;  %v488_v47 = vclz %v659_v51  ;;  %vm535_vm7 = vcmp.gt.s32.totalorder %v534_v42, 0  ;;  %v355_v6 = vsel %vm349_vm4, %v352_v57, %v354_v54 }
 0x133   :  { %v287_v5 = vor.u32 %v286_v60, %v285_v46  ;;  %v290_v23 = vshll.u32 %v289_v62, 23  ;;  %v536_v7 = vsel %vm535_vm7, %v534_v42, 0  ;;  %v476_v45 = vadd.s32 %v921_v24, %v927_v29 }
 0x134   :  { %v660_v50 = vadd.s32 4294967294, %v488_v47  ;;  %v1027_v9 = vsel %vm422_vm3, %v506_v48, %v482_v11  ;;  %vm373_vm8 = vc.u32 %v1008_v56, %v1011_v0  ;;  %v374_v10 = vadd.s32 1, %v1012_v2 }
 0x135   :  { %v291_v25 = vor.u32 4788187, %v290_v23  ;;  %v532_v58 = vor.u32 8388608, %v933_v34  ;;  %v538_v12 = vand.u32 31, %v536_v7  ;;  %v294_v37 = vcvt.s32.f32 %v287_v5 }
 0x136   :  { %v1033_v13 = vand.u32 3, %v305_v3  ;;  %vm661_vm9 = vcmp.lt.s32.totalorder %v660_v50, 0  ;;  %v371_v24 = vmul.u32 %v941_v38, %v355_v6  ;;  %v375_v11 = vsel %vm373_vm8, %v374_v10, %v1012_v2 }
 0x137   :  { %v292_v29 = vand.u32 2147483647, %v291_v25  ;;  %v491_v14 = vsel %vm661_vm9, 0, %v660_v50  ;;  %v539_v15 = vsub.s32 32, %v538_v12  ;;  %v509_v41 = vsel %vm1017_vm6, 0, %v1027_v9 }
 0x138   :  { %v492_v16 = vsub.s32 32, %v491_v14  ;;  %v496_v40 = vsub.s32 4294967266, %v491_v14  ;;  %v376_v19 = vadd.s32 %v375_v11, %v371_v24  ;;  %v1040_v20 = vshrl.u32 %v536_v7, 5 }
 0x139   :  { %v295_v34 = vmul.f32 %v294_v37, %v292_v29  ;;  %v542_v21 = vshrl.u32 %v784_v59, %v539_v15  ;;  %v1043_v27 = vshll.u32 %v532_v58, 8  ;;  %v493_v38 = vshll.u32 %v986_v26, %v491_v14 }
 0x13a   :  { %v494_v30 = vshrl.u32 %v476_v45, %v492_v16  ;;  %v497_v31 = vadd.s32 127, %v496_v40  ;;  %v377_v57 = vadd.s32 536870912, %v376_v19  ;;  %v541_v33 = vshll.u32 %v783_v55, %v538_v12 }
 0x13b   :  { %v296_v32 = vxor.u32 2147483648, %v295_v34  ;;  %v544_v35 = vshll.u32 %v784_v59, %v538_v12  ;;  %v545_v36 = vshrl.u32 %v785_v61, %v539_v15  ;;  %v548_v48 = vshrl.u32 %v786_v63, %v539_v15 }
 0x13c   :  { %v495_v42 = vor.u32 %v494_v30, %v493_v38  ;;  %v498_v53 = vshll.u32 %v497_v31, 23  ;;  %v1049_v44 = vshrl.u32 %v377_v57, 30  ;;  %v543_v26 = vor.u32 %v542_v21, %v541_v33 }
 0x13d   :  { %v297_v54 = vsel %vm214_vm13, %v296_v32, %v295_v34  ;;  %v547_v46 = vshll.u32 %v785_v61, %v538_v12  ;;  %v551_v51 = vshrl.u32 %v787_v1, %v539_v15  ;;  %v550_v62 = vshll.u32 %v786_v63, %v538_v12 }
 0x13e   :  { %v300_v59 = vsel %vm955_vm15, %v837_v17, %v297_v54  ;;  %v499_v52 = vor.u32 4788187, %v498_v53  ;;  %v379_v60 = vshll.u32 %v1049_v44, 30  ;;  %v502_v2 = vcvt.s32.f32 %v495_v42 }
 0x13f   :  { %692 = vcosq.f32 %v300_v59  ;;  %v546_v3 = vor.u32 %v545_v36, %v544_v35  ;;  %v549_v47 = vor.u32 %v548_v48, %v547_v46  ;;  %v552_v61 = vor.u32 %v551_v51, %v550_v62 }
 0x140   :  { %694 = vsinq.f32 %v300_v59  ;;  %v500_v5 = vand.u32 2147483647, %v499_v52  ;;  %v1061_v23 = vsub.s32 %v376_v19, %v379_v60  ;;  %v553_v6 = vshll.u32 %v787_v1, %v538_v12 }
 0x141   :  { %v554_v7 = vshrl.u32 %v788_v8, %v539_v15  ;;  %vm556_vm10 = vcmp.lt.s32.totalorder %v1040_v20, 1  ;;  %vm559_vm11 = vcmp.lt.s32.totalorder %v1040_v20, 4  ;;  %v540_v45 = vshrl.u32 %v783_v55, %v539_v15 }
 0x142   :  { %v503_v43 = vmul.f32 %v502_v2, %v500_v5  ;;  %v382_v63 = vsub.s32 0, %v1061_v23  ;;  %v561_v50 = vsel %vm559_vm11, %v549_v47, 2102212464  ;;  %vm557_vm12 = vcmp.lt.s32.totalorder %v1040_v20, 2 }
 0x143   :  { %v555_v25 = vor.u32 %v554_v7, %v553_v6  ;;  %vm558_vm13 = vcmp.lt.s32.totalorder %v1040_v20, 3  ;;  %v564_v1 = vsel %vm556_vm10, %v543_v26, %v546_v3  ;;  %v560_v58 = vsel %vm556_vm10, %v540_v45, %v543_v26 }
 0x144   :  { %v504_v8 = vxor.u32 2147483648, %v503_v43  ;;  %v655_v10 = vmin.u32 %v382_v63, %v1061_v23  ;;  %v565_v55 = vsel %vm559_vm11, %v552_v61, 920167782  ;;  %v562_v12 = vsel %vm558_vm13, %v546_v3, %v561_v50 }
 0x145   :  { %v566_v37 = vsel %vm558_vm13, %v549_v47, %v565_v55  ;;  %v568_v24 = vsel %vm556_vm10, %v546_v3, %v549_v47  ;;  %v569_v29 = vsel %vm559_vm11, %v555_v25, 1326507024  ;;  %v513_v32 = vadd.s32 3, %v509_v41 }
 0x146   :  { %v505_v14 = vsel %vm422_vm3, %v504_v8, %v503_v43  ;;  %v384_v11 = vclz %v655_v10  ;;  %v567_v15 = vsel %vm557_vm12, %v564_v1, %v566_v37  ;;  %v570_v16 = vsel %vm558_vm13, %v552_v61, %v569_v29 }
 0x147   :  { %v508_v40 = vsel %vm1017_vm6, %v839_v18, %v505_v14  ;;  %v571_v19 = vsel %vm557_vm12, %v568_v24, %v570_v16  ;;  %v1094_v34 = vmul.u32.u64.low %v1043_v27, %v567_v15  ;;  %v1095_v21 = vmul.u32.u64.high %v1043_v27, %v567_v15, %v1094_v34 }
 0x148   :  { %696 = vcosq.f32 %v508_v40  ;;  %v656_v38 = vadd.s32 4294967294, %v384_v11  ;;  %v1099_v30 = vmul.u32.u64.low %v1043_v27, %v571_v19  ;;  %v1100_v31 = vmul.u32.u64.high %v1043_v27, %v571_v19, %v1099_v30 }
 0x149   :  { %v693_v57 = vpop.eup %692  ;;  %698 = vsinq.f32 %v508_v40  ;;  %v563_v33 = vsel %vm557_vm12, %v560_v58, %v562_v12  ;;  %vm304_vm14 = vweird.f32 %v837_v17  ;;  %vm307_vm0 = vcmp.lt.s32.totalorder %v1033_v13, 2 }
 0x14a   :  { %v695_v35 = vpop.eup %694  ;;  %vm657_vm15 = vcmp.lt.s32.totalorder %v656_v38, 0  ;;  %vm308_vm1 = vcmp.eq.s32.totalorder %v1033_v13, 0  ;;  %v312_v36 = vxor.u32 2147483648, %v693_v57  ;;  %v582_v53 = vadd.s32 1, %v1095_v21 }
 0x14b   :  { %v387_v42 = vsel %vm657_vm15, 0, %v656_v38  ;;  %v309_v48 = vxor.u32 2147483648, %v695_v35  ;;  %vm311_vm2 = vcmp.eq.s32.totalorder %v1033_v13, 2  ;;  %v372_v4 = vadd.s32 %v1011_v0, %v1008_v56 }
 0x14c   :  { %v388_v9 = vsub.s32 32, %v387_v42  ;;  %v392_v41 = vsub.s32 4294967266, %v387_v42  ;;  %v579_v20 = vmul.u32 %v1043_v27, %v563_v33  ;;  %v389_v54 = vshll.u32 %v1061_v23, %v387_v42 }
 0x14d   :  { %vm581_vm3 = vc.u32 %v1100_v31, %v1094_v34  ;;  %v310_v26 = vsel %vm308_vm1, %v693_v57, %v309_v48  ;;  %v313_v46 = vsel %vm311_vm2, %v312_v36, %v695_v35  ;;  %v514_v0 = vand.u32 3, %v513_v32 }
 0x14e   :  { %v390_v51 = vshrl.u32 %v372_v4, %v388_v9  ;;  %v393_v59 = vadd.s32 127, %v392_v41  ;;  %v583_v52 = vsel %vm581_vm3, %v582_v53, %v1095_v21  ;;  %v314_v60 = vsel %vm307_vm0, %v310_v26, %v313_v46 }
 0x14f   :  { %v584_v62 = vadd.s32 %v583_v52, %v579_v20  ;;  %v315_v56 = vsel %vm304_vm14, nan, %v314_v60  ;;  %vm519_vm4 = vcmp.eq.s32.totalorder %v514_v0, 2  ;;  %vm516_vm5 = vcmp.eq.s32.totalorder %v514_v0, 0 }
 0x150   :  { %v391_v27 = vor.u32 %v390_v51, %v389_v54  ;;  %v394_v2 = vshll.u32 %v393_v59, 23  ;;  %628 = vst [vmem:[#allocation7] sm:$0x7f] %v315_v56  ;;  %v402_v50 = vsub.s32 4, %v1049_v44  ;;  %vm515_vm6 = vcmp.lt.s32.totalorder %v514_v0, 2 }
 0x151   :  { %v585_v3 = vadd.s32 536870912, %v584_v62  ;;  %vm512_vm7 = vweird.f32 %v839_v18  ;;  %vm318_vm8 = vcmp.lt.s32.totalorder %v841_v22, 0  ;;  %vm317_vm9 = vcmp.le.f32.partialorder %v316_v28, 0.7853982 }
 0x152   :  { %v697_v47 = vpop.eup %696  ;;  %v395_v5 = vor.u32 4788187, %v394_v2  ;;  %v398_v43 = vcvt.s32.f32 %v391_v27  ;;  %v403_v37 = vsel %vm318_vm8, %v402_v50, %v1049_v44  ;;  %v580_v40 = vadd.s32 %v1094_v34, %v1100_v31 }
 0x153   :  { %v699_v23 = vpop.eup %698  ;;  %v1124_v61 = vshrl.u32 %v585_v3, 30  ;;  %v520_v6 = vxor.u32 2147483648, %v697_v47  ;;  %v405_v14 = vsel %vm317_vm9, 0, %v403_v37  ;;  %vm408_vm14 = vweird.f32 %v841_v22 }
 0x154   :  { %v396_v7 = vand.u32 2147483647, %v395_v5  ;;  %v517_v63 = vxor.u32 2147483648, %v699_v23  ;;  %v409_v15 = vadd.s32 3, %v405_v14  ;;  %vm526_vm15 = vcmp.lt.s32.totalorder %v853_v39, 0 }
 0x155   :  { %v587_v13 = vshll.u32 %v1124_v61, 30  ;;  %v521_v17 = vsel %vm519_vm4, %v520_v6, %v699_v23  ;;  %v610_v54 = vsub.s32 4, %v1124_v61  ;;  %vm525_vm0 = vcmp.le.f32.partialorder %v524_v49, 0.7853982 }
 0x156   :  { %v399_v45 = vmul.f32 %v398_v43, %v396_v7  ;;  %v518_v25 = vsel %vm516_vm5, %v697_v47, %v517_v63  ;;  %v410_v28 = vand.u32 3, %v409_v15  ;;  %vm616_vm4 = vweird.f32 %v853_v39 }
 0x157   :  { %v588_v1 = vsub.s32 %v584_v62, %v587_v13  ;;  %v522_v8 = vsel %vm515_vm6, %v518_v25, %v521_v17  ;;  %v611_v51 = vsel %vm526_vm15, %v610_v54, %v1124_v61 }
 0x158   :  { %v400_v10 = vxor.u32 2147483648, %v399_v45  ;;  %v523_v58 = vsel %vm512_vm7, nan, %v522_v8  ;;  %vm415_vm11 = vcmp.eq.s32.totalorder %v410_v28, 2  ;;  %vm412_vm12 = vcmp.eq.s32.totalorder %v410_v28, 0 }
 0x159   :  { %v590_v55 = vsub.s32 0, %v588_v1  ;;  %630 = vst [vmem:[#allocation7 + $0x10] sm:$0x7f] %v523_v58  ;;  %vm411_vm13 = vcmp.lt.s32.totalorder %v410_v28, 2  ;;  %v613_v52 = vsel %vm525_vm0, 0, %v611_v51 }
 0x15a   :  { %v401_v12 = vsel %vm318_vm8, %v400_v10, %v399_v45 }
 0x15b   :  { %v404_v24 = vsel %vm317_vm9, %v841_v22, %v401_v12  ;;  %v663_v29 = vmin.u32 %v590_v55, %v588_v1  ;;  %v617_v22 = vadd.s32 3, %v613_v52 }
 0x15c   :  { %700 = vcosq.f32 %v404_v24 }
 0x15d   :  { %702 = vsinq.f32 %v404_v24  ;;  %v592_v18 = vclz %v663_v29  ;;  %v618_v60 = vand.u32 3, %v617_v22 }
 0x15f   :  { %v664_v11 = vadd.s32 4294967294, %v592_v18  ;;  %vm623_vm1 = vcmp.eq.s32.totalorder %v618_v60, 2  ;;  %vm620_vm2 = vcmp.eq.s32.totalorder %v618_v60, 0  ;;  %vm619_vm3 = vcmp.lt.s32.totalorder %v618_v60, 2 }
 0x161   :  { %vm665_vm10 = vcmp.lt.s32.totalorder %v664_v11, 0 }
 0x162   :  { %v595_v16 = vsel %vm665_vm10, 0, %v664_v11 }
 0x163   :  { %v596_v19 = vsub.s32 32, %v595_v16  ;;  %v600_v21 = vsub.s32 4294967266, %v595_v16  ;;  %v597_v38 = vshll.u32 %v588_v1, %v595_v16 }
 0x165   :  { %v598_v30 = vshrl.u32 %v580_v40, %v596_v19  ;;  %v601_v44 = vadd.s32 127, %v600_v21 }
 0x166   :  { %v701_v57 = vpop.eup %700 }
 0x167   :  { %v703_v32 = vpop.eup %702  ;;  %v599_v33 = vor.u32 %v598_v30, %v597_v38  ;;  %v602_v35 = vshll.u32 %v601_v44, 23  ;;  %v416_v36 = vxor.u32 2147483648, %v701_v57 }
 0x168   :  { %v413_v42 = vxor.u32 2147483648, %v703_v32 }
 0x169   :  { %v603_v53 = vor.u32 4788187, %v602_v35  ;;  %v417_v48 = vsel %vm415_vm11, %v416_v36, %v703_v32  ;;  %v606_v34 = vcvt.s32.f32 %v599_v33 }
 0x16a   :  { %v414_v4 = vsel %vm412_vm12, %v701_v57, %v413_v42 }
 0x16b   :  { %v604_v9 = vand.u32 2147483647, %v603_v53  ;;  %v418_v31 = vsel %vm411_vm13, %v414_v4, %v417_v48 }
 0x16c   :  { %v419_v41 = vsel %vm408_vm14, nan, %v418_v31 }
 0x16d   :  { %v607_v20 = vmul.f32 %v606_v34, %v604_v9  ;;  %629 = vst [vmem:[#allocation7 + $0x8] sm:$0x7f] %v419_v41 }
 0x16f   :  { %v608_v26 = vxor.u32 2147483648, %v607_v20 }
 0x171   :  { %v609_v46 = vsel %vm526_vm15, %v608_v26, %v607_v20 }
 0x172   :  { %v612_v59 = vsel %vm525_vm0, %v853_v39, %v609_v46 }
 0x173   :  { %704 = vcosq.f32 %v612_v59 }
 0x174   :  { %706 = vsinq.f32 %v612_v59 }
 0x17d   :  { %v705_v62 = vpop.eup %704 }
 0x17e   :  { %v707_v56 = vpop.eup %706  ;;  %v624_v0 = vxor.u32 2147483648, %v705_v62 }
 0x17f   :  { %v621_v27 = vxor.u32 2147483648, %v707_v56 }
 0x180   :  { %v625_v2 = vsel %vm623_vm1, %v624_v0, %v707_v56 }
 0x181   :  { %v622_v49 = vsel %vm620_vm2, %v705_v62, %v621_v27 }
 0x182   :  { %v626_v3 = vsel %vm619_vm3, %v622_v49, %v625_v2 }
 0x183   :  { %v627_v47 = vsel %vm616_vm4, nan, %v626_v3 }
 0x184   :  { %631 = vst [vmem:[#allocation7 + $0x18] sm:$0x7f] %v627_v47 }
 0x185   :  { %763 = shalt.err (!%p760_p6)
}
 0x186   :  { %s764_s13 = scalar_lea.hbm %s1159_s3, 512 }
 0x187   :  { %p765_p7 = scmp.ne.s32.totalorder %s1159_s3, %s764_s13  ;;  %p768_p8 = scmp.lt.u32.totalorder %s764_s13, %s1159_s3 }
 0x189   :  { %p770_p9 = pnand %p768_p8, %p765_p7 }
 0x18b   :  { %773 = shalt.err (!%p770_p9)
}
 0x18c   :  { %641 = dma.vmem_to_hbm [thread:$0]  %s639_s9, 512, %s1159_s3, [#allocation4]  }
 0x18d   :  { %778 = dma.done.wait [#allocation4], 512  }
 0x18e   :  { %779 = vsyncadd [#allocation4], 4294966784 }
 0x18f   :  { %645 = vsyncpa [#allocation3], 1 }
 0x190   :  { %646 = vsyncpa [#allocation6], 1 }
 0x191   :  { %647 = vsyncpa [#allocation4], 1 }

</bundles_post_ra>
